<compile_context>
chip_gen: v7x
topology: tpu7x:2x2x1
jax: 0.10.0
libtpu: 0.0.40
codegen_flags: <defaults>
</compile_context>

<pallas_src>
import functools

import jax
import jax.numpy as jnp
from jax import lax
from jax.experimental import pallas as pl
from jax.experimental.pallas import tpu as pltpu


# contract the LAST dim of both operands (i.e. A @ B.T) -- native MXU "NT" form.
_NT_DIMS = (((1,), (1,)), ((), ()))


def _gnn_kernel(m_ref, wd_ref, bd_ref, we_ref, out_ref, e_acc,
                *, tile_m, steps_per_split, n_valid, need_mask):
    """One step over a (tile_m)-wide slab of intermediate (dense-output) nodes."""
    p = pl.program_id(0)            # core-split index ("parallel")
    i = pl.program_id(1)            # slab index within this split ("arbitrary")

    @pl.when(i == 0)
    def _init():
        e_acc[...] = jnp.zeros_like(e_acc)

    # dense_layer partial: d[slab] = m @ Wd[slab, :]^T + bd[slab]   -> (1, tile_m)
    d = lax.dot_general(m_ref[...], wd_ref[...], _NT_DIMS,
                        preferred_element_type=jnp.float32) + bd_ref[...]

    if need_mask:  # static: only when nodes % tile_m != 0 (ragged last slab)
        g = p * steps_per_split + i
        col = g * tile_m + lax.broadcasted_iota(jnp.int32, (1, tile_m), 1)
        d = jnp.where(col < n_valid, d, 0.0)

    # final_node_embedding partial: e += d @ We[:, slab]^T          -> (1, emb)
    e_acc[...] += lax.dot_general(d.astype(we_ref.dtype), we_ref[...], _NT_DIMS,
                                  preferred_element_type=jnp.float32)

    @pl.when(i == pl.num_programs(1) - 1)
    def _finalize():
        out_ref[0] = e_acc[...].astype(out_ref.dtype)   # out block is (1, 1, emb)


def _round_up(x, m):
    return ((x + m - 1) // m) * m


def _vmem_budget_bytes():
    """~3/4 of physical VMEM: ~48 MiB on v7x, ~96 MiB on v5e/v6e."""
    cap = None
    try:
        cap = getattr(pltpu.get_tpu_info(), "vmem_capacity_bytes", None)
    except Exception:
        cap = None
    if not cap:
        cap = 64 * 1024 * 1024          # conservative fallback (v7x physical)
    return (int(cap) * 3) // 4


def _pick_tile(nodes, emb, wd_bytes, we_bytes, budget, tile_m):
    """Largest slab whose full double-buffered footprint fits the VMEM budget."""
    def fits(tm):
        wd_slab = tm * nodes * wd_bytes                       # streamed Wd row slab
        we_slab = _round_up(emb, 8) * tm * we_bytes           # streamed We column slab
        bd_slab = 8 * tm * 4                                  # bias slab (sublane-padded)
        m_res = 8 * _round_up(nodes, 128) * max(wd_bytes, 2)  # resident m row
        fixed = 2 * m_res + 4 * 8 * 128 * 4                   # m buffers + acc/out slack
        return 2 * (wd_slab + we_slab + bd_slab) + fixed <= budget

    if tile_m is not None:
        assert tile_m == nodes or tile_m % 128 == 0, \
            "tile_m must equal nodes or be a multiple of 128"
        return tile_m
    if fits(nodes):
        return nodes                      # whole Wd as a single block: no reduction grid
    for tm in (4096, 2048, 1024, 512, 256, 128):
        if tm < nodes and fits(tm):
            return tm
    return 128


def prepare_params(params, weight_dtype=jnp.bfloat16):
    """Optional one-time cast of the streamed weights (amortize across calls)."""
    p = dict(params)
    p["dense_w"] = params["dense_w"].astype(weight_dtype)
    p["emb_w"] = params["emb_w"].astype(weight_dtype)
    return p


def default_gnn_forward(x, edge_index, params, *, k_filter_size=1,
                        tile_m=None, num_core_splits=None, use_pallas=None):
    """JAX wrapper mirroring default_gnn.forward. edge_index is unused (K=1)."""
    assert k_filter_size == 1, "only ChebConv K=1 (identity term) is implemented"
    del edge_index

    nodes, c_in = x.shape
    wc, bc = params["cheb_w"], params["cheb_b"]
    wd, bd = params["dense_w"], params["dense_b"]
    we, be = params["emb_w"], params["emb_b"]
    emb = we.shape[0]
    assert wc.shape[1] == c_in and wd.shape == (nodes, nodes) and we.shape == (emb, nodes)

    # ChebConv(K=1) + channel mean folded (mean is linear): O(nodes*c_in), no nodes^2 pass.
    wcm = jnp.mean(wc.astype(jnp.float32), axis=0)                     # (c_in,)
    m = x.astype(jnp.float32) @ wcm + jnp.mean(bc.astype(jnp.float32)) # (nodes,)

    if use_pallas is None:
        use_pallas = nodes >= 512
    if not use_pallas:
        # Small-graph fast path: whole problem < 1 MB, launch overhead dominates.
        d = wd.astype(jnp.float32) @ m + bd.astype(jnp.float32)
        return we.astype(jnp.float32) @ d + be.astype(jnp.float32)

    # ---- Tiling over the intermediate (dense-output) node axis -------------------
    budget = _vmem_budget_bytes()
    wd_bytes = jnp.dtype(wd.dtype).itemsize
    we_bytes = jnp.dtype(we.dtype).itemsize
    tm = _pick_tile(nodes, emb, wd_bytes, we_bytes, budget, tile_m)
    nk = -(-nodes // tm)                               # number of row slabs of Wd

    if num_core_splits is None:
        num_core_splits = 2 if (nk >= 2 and nk % 2 == 0) else 1
    assert nk % num_core_splits == 0, "core splits must evenly divide the slab count"
    spp = nk // num_core_splits
    nodes_cover = nk * tm
    need_mask = nodes_cover != nodes

    # Small lane-dense operands (Wd and We are streamed untouched, in native layout).
    m_row = m.astype(wd.dtype)[None, :]                # (1, nodes)
    bd_row = bd.astype(jnp.float32)[None, :]           # (1, nodes)
    we_mat = we
    if need_mask:                                      # cheap O(nodes) / O(emb*pad) pads
        pad = nodes_cover - nodes
        bd_row = jnp.pad(bd_row, ((0, 0), (0, pad)))
        we_mat = jnp.pad(we_mat, ((0, 0), (0, pad)))

    kernel = functools.partial(_gnn_kernel, tile_m=tm, steps_per_split=spp,
                               n_valid=nodes, need_mask=need_mask)

    partials = pl.pallas_call(
        kernel,
        out_shape=jax.ShapeDtypeStruct((num_core_splits, 1, emb), jnp.float32),
        grid_spec=pltpu.PrefetchScalarGridSpec(
            num_scalar_prefetch=0,
            grid=(num_core_splits, spp),
            in_specs=[
                pl.BlockSpec((1, nodes), lambda p, i: (0, 0)),              # m (resident)
                pl.BlockSpec((tm, nodes), lambda p, i: (p * spp + i, 0)),   # Wd row slab (native)
                pl.BlockSpec((1, tm), lambda p, i: (0, p * spp + i)),       # bd slab
                pl.BlockSpec((emb, tm), lambda p, i: (0, p * spp + i)),     # We column slab (native)
            ],
            out_specs=pl.BlockSpec((1, 1, emb), lambda p, i: (p, 0, 0)),
            scratch_shapes=[pltpu.VMEM((1, emb), jnp.float32)],
        ),
        compiler_params=pltpu.CompilerParams(
            dimension_semantics=("parallel", "arbitrary"),
            vmem_limit_bytes=int(budget),
        ),
    )(m_row, wd, bd_row, we_mat)

    return partials.sum(axis=0)[0] + be.astype(jnp.float32)     # (emb,)


def init_params(key, nodes, in_channels, conv_out_channels, embedding_dims):
    """Deterministic synthetic parameter init (shapes follow the PyTorch module)."""
    k = jax.random.split(key, 6)
    scale = 0.1
    return {
        # ChebConv(K=1): lins[0].weight (out, in) + bias (out,)
        "cheb_w": scale * jax.random.normal(k[0], (conv_out_channels, in_channels), jnp.float32),
        "cheb_b": scale * jax.random.normal(k[1], (conv_out_channels,), jnp.float32),
        # dense_layer = Linear(nodes, nodes)
        "dense_w": scale * jax.random.normal(k[2], (nodes, nodes), jnp.float32),
        "dense_b": scale * jax.random.normal(k[3], (nodes,), jnp.float32),
        # final_node_embedding = Linear(nodes, embedding_dims)
        "emb_w": scale * jax.random.normal(k[4], (embedding_dims, nodes), jnp.float32),
        "emb_b": scale * jax.random.normal(k[5], (embedding_dims,), jnp.float32),
    }


def reference_forward(x, params):
    """Pure-jnp f32 reference of the original module's math."""
    h = x @ params["cheb_w"].T + params["cheb_b"]          # (nodes, C_out)
    m = jnp.mean(h, axis=-1)                               # (nodes,)
    d = params["dense_w"] @ m + params["dense_b"]          # (nodes,)
    e = params["emb_w"] @ d + params["emb_b"]              # (emb,)
    return e


if __name__ == "__main__":
    key = jax.random.PRNGKey(0)

    # ---- Config 1: module defaults (nodes=16, in_channels=4, conv_out=3, emb=10) ----
    nodes, edges, c_in, c_out, emb = 16, 32, 4, 3, 10
    k1, k2, k3, key = jax.random.split(key, 4)
    x = jax.random.normal(k1, (nodes, c_in), jnp.float32)
    edge_index = jax.random.randint(k2, (2, edges), 0, nodes, jnp.int32)
    params = init_params(k3, nodes, c_in, c_out, emb)
    ref = reference_forward(x, params)

    out = jax.block_until_ready(default_gnn_forward(x, edge_index, params, use_pallas=True))
    assert out.shape == (emb,), out.shape
    assert jnp.allclose(out, ref, atol=1e-5, rtol=1e-5), (out, ref)

    # Same config with one-time bf16 weight preparation (amortized-cast path).
    params_bf16 = prepare_params(params, jnp.bfloat16)
    out_b = jax.block_until_ready(default_gnn_forward(x, edge_index, params_bf16, use_pallas=True))
    assert jnp.allclose(out_b, ref, atol=1e-2, rtol=1e-2), (out_b, ref)

    # ---- Config 2: larger graph -> tiled slabs, ragged-tail mask, 2-way core split ----
    nodes2, edges2, c_in2 = 200, 64, 5
    k1, k2, k3, key = jax.random.split(key, 4)
    x2 = jax.random.normal(k1, (nodes2, c_in2), jnp.float32)
    edge_index2 = jax.random.randint(k2, (2, edges2), 0, nodes2, jnp.int32)
    params2 = init_params(k3, nodes2, c_in2, c_out, emb)
    ref2 = reference_forward(x2, params2)

    out2 = jax.block_until_ready(
        default_gnn_forward(x2, edge_index2, params2, tile_m=128, use_pallas=True))
    assert out2.shape == (emb,), out2.shape
    assert jnp.allclose(out2, ref2, atol=1e-4, rtol=1e-4), (out2, ref2)

    out2b = jax.block_until_ready(
        default_gnn_forward(x2, edge_index2, prepare_params(params2, jnp.bfloat16),
                            tile_m=128, use_pallas=True))
    assert jnp.allclose(out2b, ref2, atol=1e-2, rtol=1e-2), (out2b, ref2)

    # Auto small-graph fast path (pure jnp, no Pallas) for the same config.
    out2c = jax.block_until_ready(default_gnn_forward(x2, edge_index2, params2))
    assert jnp.allclose(out2c, ref2, atol=1e-5, rtol=1e-5), (out2c, ref2)

    print("KERNEL_OK")
</pallas_src>

<mosaic_0001>
module attributes {stable_mosaic.version = 11 : i64} {
  func.func @_gnn_kernel(%arg0: i32, %arg1: i32, %arg2: memref<1x16xf32, #tpu.memory_space<vmem>>, %arg3: memref<16x16xf32, #tpu.memory_space<vmem>>, %arg4: memref<1x16xf32, #tpu.memory_space<vmem>>, %arg5: memref<10x16xf32, #tpu.memory_space<vmem>>, %arg6: memref<1x1x10xf32, #tpu.memory_space<vmem>>, %arg7: memref<1x10xf32, #tpu.memory_space<vmem>>) attributes {dimension_semantics = [#tpu.dimension_semantics<parallel>, #tpu.dimension_semantics<arbitrary>], iteration_bounds = array<i64: 1, 1>, scalar_prefetch = 0 : i64, scratch_operands = 1 : i64, tpu.core_type = #tpu.core_type<tc>, window_params = [{pipeline_mode = #tpu.pipeline_mode<synchronous>, transform_indices = @transform_0, window_bounds = array<i64: 1, 16>}, {transform_indices = @transform_1, window_bounds = array<i64: 16, 16>}, {transform_indices = @transform_2, window_bounds = array<i64: 1, 16>}, {transform_indices = @transform_3, window_bounds = array<i64: 10, 16>}, {transform_indices = @transform_4, window_bounds = array<i64: 1, 1, 10>}]} {
    %c0_i32 = arith.constant 0 : i32
    %0 = arith.cmpi eq, %arg1, %c0_i32 : i32
    %1 = arith.extui %0 : i1 to i32
    %c0_i32_0 = arith.constant 0 : i32
    %2 = arith.cmpi ne, %1, %c0_i32_0 : i32
    scf.if %2 {
      %cst_15 = arith.constant 0.000000e+00 : f32
      %16 = vector.broadcast %cst_15 : f32 to vector<1x10xf32>
      %c0_16 = arith.constant 0 : index
      %c0_17 = arith.constant 0 : index
      %17 = vector.load %arg7[%c0_16, %c0_17] : memref<1x10xf32, #tpu.memory_space<vmem>>, vector<1x10xf32>
      tpu.vector_store %arg7[%c0_16, %c0_17], %16 {strides = array<i32>} : memref<1x10xf32, #tpu.memory_space<vmem>>, vector<1x10xf32>,
    } else {
    }
    %c0 = arith.constant 0 : index
    %c0_1 = arith.constant 0 : index
    %3 = vector.load %arg2[%c0, %c0_1] : memref<1x16xf32, #tpu.memory_space<vmem>>, vector<1x16xf32>
    %c0_2 = arith.constant 0 : index
    %c0_3 = arith.constant 0 : index
    %4 = vector.load %arg3[%c0_2, %c0_3] : memref<16x16xf32, #tpu.memory_space<vmem>>, vector<16x16xf32>
    %cst = arith.constant dense<0.000000e+00> : vector<1x16xf32>
    %5 = tpu.matmul %3, %4, %cst {dimension_numbers = #tpu.dot_dimension_numbers<[1], [1], [0], [0], [0, 0, 1, 0], [], []>} : vector<1x16xf32>, vector<16x16xf32>, vector<1x16xf32> -> vector<1x16xf32>
    %c0_4 = arith.constant 0 : index
    %c0_5 = arith.constant 0 : index
    %6 = vector.load %arg4[%c0_4, %c0_5] : memref<1x16xf32, #tpu.memory_space<vmem>>, vector<1x16xf32>
    %7 = arith.addf %5, %6 : vector<1x16xf32>
    %c0_6 = arith.constant 0 : index
    %c0_7 = arith.constant 0 : index
    %8 = vector.load %arg7[%c0_6, %c0_7] : memref<1x10xf32, #tpu.memory_space<vmem>>, vector<1x10xf32>
    %c0_8 = arith.constant 0 : index
    %c0_9 = arith.constant 0 : index
    %9 = vector.load %arg5[%c0_8, %c0_9] : memref<10x16xf32, #tpu.memory_space<vmem>>, vector<10x16xf32>
    %cst_10 = arith.constant dense<0.000000e+00> : vector<1x10xf32>
    %10 = tpu.matmul %7, %9, %cst_10 {dimension_numbers = #tpu.dot_dimension_numbers<[1], [1], [0], [0], [0, 0, 1, 0], [], []>} : vector<1x16xf32>, vector<10x16xf32>, vector<1x10xf32> -> vector<1x10xf32>
    %11 = arith.addf %8, %10 : vector<1x10xf32>
    %c0_11 = arith.constant 0 : index
    %c0_12 = arith.constant 0 : index
    %12 = vector.load %arg7[%c0_11, %c0_12] : memref<1x10xf32, #tpu.memory_space<vmem>>, vector<1x10xf32>
    tpu.vector_store %arg7[%c0_11, %c0_12], %11 {strides = array<i32>} : memref<1x10xf32, #tpu.memory_space<vmem>>, vector<1x10xf32>,
    %c0_i32_13 = arith.constant 0 : i32
    %13 = arith.cmpi eq, %arg1, %c0_i32_13 : i32
    %14 = arith.extui %13 : i1 to i32
    %c0_i32_14 = arith.constant 0 : i32
    %15 = arith.cmpi ne, %14, %c0_i32_14 : i32
    scf.if %15 {
      %c0_15 = arith.constant 0 : index
      %c0_16 = arith.constant 0 : index
      %16 = vector.load %arg7[%c0_15, %c0_16] : memref<1x10xf32, #tpu.memory_space<vmem>>, vector<1x10xf32>
      %c0_17 = arith.constant 0 : index
      %c0_18 = arith.constant 0 : index
      %c0_19 = arith.constant 0 : index
      %17 = vector.load %arg6[%c0_17, %c0_18, %c0_19] : memref<1x1x10xf32, #tpu.memory_space<vmem>>, vector<1x1x10xf32>
      %18 = vector.shape_cast %17 : vector<1x1x10xf32> to vector<1x10xf32>
      %19 = vector.shape_cast %16 : vector<1x10xf32> to vector<1x1x10xf32>
      tpu.vector_store %arg6[%c0_17, %c0_18, %c0_19], %19 {strides = array<i32>} : memref<1x1x10xf32, #tpu.memory_space<vmem>>, vector<1x1x10xf32>,
    } else {
    }
    return
  }
  func.func @transform_0(%arg0: i32, %arg1: i32) -> (i32, i32) {
    %c0_i32 = arith.constant 0 : i32
    %c0_i32_0 = arith.constant 0 : i32
    %c0_i32_1 = arith.constant 0 : i32
    return %c0_i32, %c0_i32_0 : i32, i32
  }
  func.func @transform_1(%arg0: i32, %arg1: i32) -> (i32, i32) {
    %c1_i32 = arith.constant 1 : i32
    %0 = arith.muli %arg0, %c1_i32 : i32
    %1 = arith.addi %0, %arg1 : i32
    %c0_i32 = arith.constant 0 : i32
    %c0_i32_0 = arith.constant 0 : i32
    return %1, %c0_i32 : i32, i32
  }
  func.func @transform_2(%arg0: i32, %arg1: i32) -> (i32, i32) {
    %c1_i32 = arith.constant 1 : i32
    %0 = arith.muli %arg0, %c1_i32 : i32
    %1 = arith.addi %0, %arg1 : i32
    %c0_i32 = arith.constant 0 : i32
    %c0_i32_0 = arith.constant 0 : i32
    return %c0_i32, %1 : i32, i32
  }
  func.func @transform_3(%arg0: i32, %arg1: i32) -> (i32, i32) {
    %c1_i32 = arith.constant 1 : i32
    %0 = arith.muli %arg0, %c1_i32 : i32
    %1 = arith.addi %0, %arg1 : i32
    %c0_i32 = arith.constant 0 : i32
    %c0_i32_0 = arith.constant 0 : i32
    return %c0_i32, %1 : i32, i32
  }
  func.func @transform_4(%arg0: i32, %arg1: i32) -> (i32, i32, i32) {
    %c0_i32 = arith.constant 0 : i32
    %c0_i32_0 = arith.constant 0 : i32
    %c0_i32_1 = arith.constant 0 : i32
    return %arg0, %c0_i32, %c0_i32_0 : i32, i32, i32
  }
}

</mosaic_0001>

<bundles_post_ra>
// kernel: tpu_custom_call.1
= control target key start
LH: loop header
LB: loop body
LE: loop exit
PB: predicated region body
PF: predicated region fallthrough
CT: control target
= control target key end

     0   :  { %9 = vsyncpa [#allocation4], 0  ;;  %s515_s0 = inlined_call_operand.hbm [shape: f32[1,16], index: 0, kind: input, shape index: {}]   ;;  %s516_s1 = inlined_call_operand.hbm [shape: f32[16,16], index: 1, kind: input, shape index: {}]   ;;  %s517_s2 = inlined_call_operand.vmem [shape: f32[1,16], index: 2, kind: input, shape index: {}]   ;;  %s518_s3 = inlined_call_operand.hbm [shape: f32[10,16], index: 3, kind: input, shape index: {}]   ;;  %s519_s4 = inlined_call_operand.hbm [shape: f32[1,1,10], index: 4, kind: output, shape index: {}]  }
   0x1   :  { %10 = vsyncpa [#allocation7], 0 }
   0x2   :  { %11 = vsyncpa [#allocation5], 0  ;;  %s417_s15 = smov [#allocation6]   ;;  %s323_s19 = scalar_lea.hbm %s516_s1, 256 }
   0x3   :  { %s31_s16 = sshll.u32 %s417_s15, 4  ;;  %p324_p0 = scmp.ne.s32.totalorder %s516_s1, %s323_s19  ;;  %s32_s16 = int_to_ptr.vmem [resolvable:$true] %s31_s16 }
   0x4   :  { %p327_p1 = scmp.lt.u32.totalorder %s323_s19, %s516_s1 }
   0x6   :  { %p329_p2 = pnand %p327_p1, %p324_p0 }
   0x8   :  { %332 = shalt.err (!%p329_p2)
}
   0x9   :  { %s333_s24 = scalar_lea.vmem %s32_s16, 256  ;;  %p338_p4 = scmp.lt.s32.totalorder %s32_s16, %s32_s16 }
   0xa   :  { %p334_p3 = scmp.ne.s32.totalorder %s32_s16, %s333_s24  ;;  %p339_p5 = scmp.lt.s32.totalorder %s333_s24, %s333_s24 }
   0xc   :  { %p340_p6 = por %p339_p5, %p338_p4 }
   0xe   :  { %p341_p7 = pnand %p340_p6, %p334_p3 }
  0x10   :  { %344 = shalt.err (!%p341_p7)
}
  0x11   :  { %s418_s25 = smov 128   ;;  %s419_s26 = smov 8  }
  0x12   :  { %37 = dma.hbm_to_vmem [thread:$0]  %s516_s1, 256, %s32_s16, [#allocation7], %s418_s25, %s418_s25, %s419_s26  }
  0x13   :  { %s420_s29 = smov [#allocation3]   ;;  %s421_s5 = smov [#allocation8]  }
  0x14   :  { %s18_s30 = sshll.u32 %s420_s29, 4  ;;  %s53_s6 = sshll.u32 %s421_s5, 4  ;;  %s19_s30 = int_to_ptr.vmem [resolvable:$true] %s18_s30  ;;  %s54_s6 = int_to_ptr.vmem [resolvable:$true] %s53_s6 }
  0x15   :  { %s345_s9 = scalar_lea.hbm %s515_s0, 16 }
  0x16   :  { %p346_p8 = scmp.ne.s32.totalorder %s515_s0, %s345_s9  ;;  %p349_p9 = scmp.lt.u32.totalorder %s345_s9, %s515_s0 }
  0x18   :  { %p351_p10 = pnand %p349_p9, %p346_p8 }
  0x1a   :  { %354 = shalt.err (!%p351_p10)
}
  0x1b   :  { %s355_s1 = scalar_lea.vmem %s19_s30, 16  ;;  %s359_s14 = scalar_lea.vmem %s19_s30, 32 }
  0x1c   :  { %p356_p11 = scmp.ne.s32.totalorder %s19_s30, %s355_s1  ;;  %p360_p12 = scmp.lt.s32.totalorder %s19_s30, %s19_s30 }
  0x1d   :  { %p361_p13 = scmp.lt.s32.totalorder %s359_s14, %s355_s1 }
  0x1f   :  { %p362_p0 = por %p361_p13, %p360_p12 }
  0x21   :  { %p363_p1 = pnand %p362_p0, %p356_p11 }
  0x23   :  { %366 = shalt.err (!%p363_p1)
}
  0x24   :  { %21 = dma.hbm_to_vmem [thread:$0]  %s515_s0, 16, %s19_s30, [#allocation4]  }
  0x25   :  { %s367_s19 = scalar_lea.hbm %s518_s3, 256 }
  0x26   :  { %p368_p2 = scmp.ne.s32.totalorder %s518_s3, %s367_s19  ;;  %p371_p3 = scmp.lt.u32.totalorder %s367_s19, %s518_s3 }
  0x28   :  { %p373_p4 = pnand %p371_p3, %p368_p2 }
  0x2a   :  { %376 = shalt.err (!%p373_p4)
}
  0x2b   :  { %s377_s24 = scalar_lea.vmem %s54_s6, 256  ;;  %p382_p6 = scmp.lt.s32.totalorder %s54_s6, %s54_s6 }
  0x2c   :  { %p378_p5 = scmp.ne.s32.totalorder %s54_s6, %s377_s24  ;;  %p383_p7 = scmp.lt.s32.totalorder %s377_s24, %s377_s24 }
  0x2e   :  { %p384_p8 = por %p383_p7, %p382_p6 }
  0x30   :  { %p385_p9 = pnand %p384_p8, %p378_p5 }
  0x32   :  { %388 = shalt.err (!%p385_p9)
}
  0x33   :  { %59 = dma.hbm_to_vmem [thread:$0]  %s518_s3, 256, %s54_s6, [#allocation7], %s418_s25, %s418_s25, %s419_s26  }
  0x34   :  { %411 = dma.done.wait [#allocation4], 16  }
  0x35   :  { %412 = vsyncadd [#allocation4], 4294967280 }
  0x36   :  { %413 = dma.done.wait [#allocation7], 512  }
  0x37   :  { %414 = vsyncadd [#allocation7], 4294966784  ;;  %vm85_vm0 = vcmask 73728   ;;  %v422_v0 = vmov 0.0|0.0   ;;  %v423_v1 = vmov 0.0   ;;  %vm424_vm1 = vmmov 0  }
  0x38   :  { %306 = vmatprep.subr.bf16.mxu0 %v422_v0  ;;  %86 = vst.msk [vmem:[#allocation2] sm:$0x1] %vm85_vm0, %v423_v1  ;;  %310 = vmatprep.subr.bf16.mxu1 %v422_v0  ;;  %vm91_vm2 = vcmask 130048   ;;  %v88_v2 = vld [vmem:[#allocation6] sm:$0xff]  ;;  %v89_v3 = vld [vmem:[#allocation6 + $0x8] sm:$0xff]  ;;  %v172_v5 = vld [vmem:[#allocation8] sm:$0xff] }
  0x39   :  { %296 = vmatprep.mubr.msk.f32.mxu0 %vm424_vm1, %v423_v1  ;;  %303 = vmatprep.mubr.msk.f32.mxu1 %vm424_vm1, %v423_v1  ;;  %vm308_vm3 = vmpackc.low %vm91_vm2, %vm91_vm2  ;;  %v307_v4 = vpack.c.bf16 %v89_v3, %v88_v2  ;;  %v173_v6 = vld [vmem:[#allocation8 + $0x8] sm:$0x3]  ;;  %v87_v8 = vld [vmem:[#allocation3] sm:$0x1]  ;;  %s425_s26 = smov [#allocation9]  }
  0x3a   :  { %v311_v7 = vpack.c.bf16 %v173_v6, %v172_v5  ;;  %v90_v9 = vld [vmem:[%s517_s2] sm:$0x1]  ;;  %s267_s28 = sshll.u32 %s425_s26, 4  ;;  %s268_s28 = int_to_ptr.vmem [resolvable:$true] %s267_s28 }
  0x3b   :  { %309 = vmatpush3.bf16.xpose.msk.msra.mxu0 %vm308_vm3, %v307_v4  ;;  %s389_s29 = scalar_lea.vmem %s268_s28, 16  ;;  %s393_s2 = scalar_lea.vmem %s268_s28, 32 }
  0x3c   :  { %313 = vmatpush3.bf16.xpose.msk.msra.mxu1 %vm308_vm3, %v311_v7  ;;  %p390_p10 = scmp.ne.s32.totalorder %s268_s28, %s389_s29  ;;  %p394_p11 = scmp.lt.s32.totalorder %s268_s28, %s268_s28 }
  0x3d   :  { %p395_p12 = scmp.lt.s32.totalorder %s393_s2, %s389_s29 }
  0x3f   :  { %v171_v13 = vld [vmem:[#allocation2] sm:$0x1]  ;;  %p396_p13 = por %p395_p12, %p394_p11 }
  0x41   :  { %p397_p0 = pnand %p396_p13, %p390_p10 }
  0x42   :  { %297 = vmatmul.mubr.msk.f32.vlgmr.msra.gmra.mrb[0].mxu0 %vm91_vm2, %v87_v8 }
 0x115   :  { %v167_v10 = vpop.f32.mrb[0].mxu0 }
 0x116   :  { %v168_v11 = vadd.f32 %v167_v10, %v90_v9  ;;  %v298_v12 = vpop.f32.mrb[1].mxu0 }
 0x118   :  { %304 = vmatmul.mubr.msk.f32.vlgmr.msra.gmra.mrb[0].mxu1 %vm91_vm2, %v168_v11 }
 0x1eb   :  { %v249_v14 = vpop.f32.mrb[0].mxu1 }
 0x1ec   :  { %v253_v15 = vadd.f32 %v249_v14, %v171_v13  ;;  %v305_v16 = vpop.f32.mrb[1].mxu1 }
 0x1ee   :  { %255 = vst.msk [vmem:[#allocation2] sm:$0x1] %vm85_vm0, %v253_v15 }
 0x1f5   :  { %v259_v17 = vld [vmem:[#allocation2] sm:$0x1] }
 0x1f6   :  { %260 = vst.msk [vmem:[#allocation9] sm:$0x1] %vm85_vm0, %v259_v17 }
 0x1f7   :  { %400 = shalt.err (!%p397_p0)
}
 0x1f8   :  { %s401_s6 = scalar_lea.hbm %s519_s4, 16 }
 0x1f9   :  { %p402_p1 = scmp.ne.s32.totalorder %s519_s4, %s401_s6  ;;  %p405_p2 = scmp.lt.u32.totalorder %s401_s6, %s519_s4 }
 0x1fb   :  { %p407_p3 = pnand %p405_p2, %p402_p1 }
 0x1fd   :  { %410 = shalt.err (!%p407_p3)
}
 0x1fe   :  { %270 = dma.vmem_to_hbm [thread:$0]  %s268_s28, 16, %s519_s4, [#allocation5]  }
 0x1ff   :  { %415 = dma.done.wait [#allocation5], 16  }
 0x200   :  { %416 = vsyncadd [#allocation5], 4294967280 }
 0x201   :  { %274 = vsyncpa [#allocation4], 1 }
 0x202   :  { %275 = vsyncpa [#allocation7], 1 }
 0x203   :  { %276 = vsyncpa [#allocation5], 1 }

</bundles_post_ra>
